<compile_context>
chip_gen: v7x
topology: tpu7x:2x2x1
jax: 0.10.0
libtpu: 0.0.40
codegen_flags: <defaults>
</compile_context>

<pallas_src>
import functools

import jax
import jax.numpy as jnp
from jax.experimental import pallas as pl
from jax.experimental.pallas import tpu as pltpu

# dt=None in the module => alpha = 1, oneminusalpha = 0 (CTRNN default ctor)
ALPHA = 1.0
ONE_MINUS_ALPHA = 1.0 - ALPHA


# ---------------------------------------------------------------------------
# Generic fused linear: y = x @ W + b (whole arrays resident in VMEM; fine for
# the small shapes used here).
# ---------------------------------------------------------------------------
def _linear_kernel(x_ref, w_ref, b_ref, o_ref):
    o_ref[...] = (jnp.dot(x_ref[...], w_ref[...],
                          preferred_element_type=jnp.float32)
                  + b_ref[...])


def pallas_linear(x2d, w, b):
    M, _ = x2d.shape
    N = w.shape[1]
    return pl.pallas_call(
        _linear_kernel,
        out_shape=jax.ShapeDtypeStruct((M, N), jnp.float32),
    )(x2d, w, b.reshape(1, N))


# ---------------------------------------------------------------------------
# Serial CTRNN recurrence over time chunks.
#   p_ref : (T_CHUNK, B, H) precomputed input projection (+ fused biases)
#   whh   : (H, H) recurrent weight (already transposed to (in, out))
#   act   : (T_CHUNK, B, H) hidden activity written back per chunk
#   h     : (B, H) VMEM scratch carrying the hidden state across grid steps
# ---------------------------------------------------------------------------
def _recurrence_kernel(p_ref, whh_ref, act_ref, h_scratch, *, t_chunk):
    @pl.when(pl.program_id(0) == 0)
    def _():
        h_scratch[...] = jnp.zeros_like(h_scratch)

    whh = whh_ref[...]
    h = h_scratch[...]
    # t_chunk is small and static -> fully unrolled loop (LLO sees everything)
    for tt in range(t_chunk):
        pre = p_ref[tt] + jnp.dot(h, whh, preferred_element_type=jnp.float32)
        if ONE_MINUS_ALPHA != 0.0:
            h = jnp.maximum(h * ONE_MINUS_ALPHA + pre * ALPHA, 0.0)
        else:
            h = jnp.maximum(pre, 0.0)          # alpha == 1: drop h*(1-a) term
        act_ref[tt] = h
    h_scratch[...] = h


def rnn_net_forward(x, w_ih, b_ih, w_hh, b_hh, w_fc, b_fc, *, t_chunk=32):
    """x: (seq, batch, input_size). Weights in PyTorch (out, in) layout; biases 1-D."""
    S, B, I = x.shape
    H = w_ih.shape[0]
    O = w_fc.shape[0]

    x = jnp.asarray(x, jnp.float32)
    w_ih_t = jnp.asarray(w_ih, jnp.float32).T          # (I, H)
    w_hh_t = jnp.asarray(w_hh, jnp.float32).T          # (H, H)
    w_fc_t = jnp.asarray(w_fc, jnp.float32).T          # (H, O)
    b_rec = (jnp.asarray(b_ih, jnp.float32)
             + jnp.asarray(b_hh, jnp.float32))         # fused recurrent bias
    b_fc = jnp.asarray(b_fc, jnp.float32)

    # 1) hoisted input projection: one big MXU-friendly matmul over all timesteps
    p = pallas_linear(x.reshape(S * B, I), w_ih_t, b_rec).reshape(S, B, H)

    # 2) time-chunked serial recurrence
    t_chunk = min(t_chunk, S)
    num_chunks = pl.cdiv(S, t_chunk)
    s_pad = num_chunks * t_chunk
    if s_pad != S:
        # padded timesteps come after the real ones and are sliced off below
        p = jnp.pad(p, ((0, s_pad - S), (0, 0), (0, 0)))

    act = pl.pallas_call(
        functools.partial(_recurrence_kernel, t_chunk=t_chunk),
        out_shape=jax.ShapeDtypeStruct((s_pad, B, H), jnp.float32),
        grid_spec=pltpu.PrefetchScalarGridSpec(
            num_scalar_prefetch=0,
            grid=(num_chunks,),
            in_specs=[
                pl.BlockSpec((t_chunk, B, H), lambda c: (c, 0, 0)),   # P chunk
                pl.BlockSpec((H, H), lambda c: (0, 0)),               # W_hh^T (resident)
            ],
            out_specs=pl.BlockSpec((t_chunk, B, H), lambda c: (c, 0, 0)),
            scratch_shapes=[pltpu.VMEM((B, H), jnp.float32)],         # hidden carry
        ),
        compiler_params=pltpu.CompilerParams(
            dimension_semantics=("arbitrary",)),   # hidden state carries across chunks
    )(p, w_hh_t)
    act = act[:S]

    # 3) hoisted fc projection: one (S*B, H) x (H, O) matmul
    out = pallas_linear(act.reshape(S * B, H), w_fc_t, b_fc).reshape(S, B, O)
    return out, act


def reference_forward(x, w_ih, b_ih, w_hh, b_hh, w_fc, b_fc):
    S, B, I = x.shape
    H = w_ih.shape[0]
    h = jnp.zeros((B, H), jnp.float32)
    acts = []
    for t in range(S):
        pre = x[t] @ w_ih.T + b_ih + h @ w_hh.T + b_hh
        h = jnp.maximum(h * ONE_MINUS_ALPHA + pre * ALPHA, 0.0)
        acts.append(h)
    act = jnp.stack(acts, axis=0)
    out = act @ w_fc.T + b_fc
    return out, act


if __name__ == "__main__":
    key = jax.random.PRNGKey(0)
    seq_len, batch, input_size, hidden_size, output_size = 8, 4, 16, 32, 8

    k_x, k_wi, k_bi, k_bh, k_wf, k_bf = jax.random.split(key, 6)

    x = jax.random.normal(k_x, (seq_len, batch, input_size), jnp.float32)

    # Deterministic parameter init (shapes follow nn.Linear; h2h weight = 0.5 * I per reset_parameters)
    bound_i = 1.0 / (input_size ** 0.5)
    w_ih = jax.random.uniform(k_wi, (hidden_size, input_size), jnp.float32, -bound_i, bound_i)
    b_ih = jax.random.uniform(k_bi, (hidden_size,), jnp.float32, -bound_i, bound_i)

    bound_h = 1.0 / (hidden_size ** 0.5)
    w_hh = 0.5 * jnp.eye(hidden_size, dtype=jnp.float32)
    b_hh = jax.random.uniform(k_bh, (hidden_size,), jnp.float32, -bound_h, bound_h)

    w_fc = jax.random.uniform(k_wf, (output_size, hidden_size), jnp.float32, -bound_h, bound_h)
    b_fc = jax.random.uniform(k_bf, (output_size,), jnp.float32, -bound_h, bound_h)

    out, act = rnn_net_forward(x, w_ih, b_ih, w_hh, b_hh, w_fc, b_fc)
    jax.block_until_ready((out, act))

    out_ref, act_ref = reference_forward(x, w_ih, b_ih, w_hh, b_hh, w_fc, b_fc)
    assert jnp.allclose(out, out_ref, atol=1e-5), "out mismatch"
    assert jnp.allclose(act, act_ref, atol=1e-5), "rnn_activity mismatch"

    print("KERNEL_OK")
</pallas_src>

<mosaic_0001>
module attributes {stable_mosaic.version = 11 : i64} {
  func.func @_linear_kernel(%arg0: memref<32x16xf32, #tpu.memory_space<vmem>>, %arg1: memref<16x32xf32, #tpu.memory_space<vmem>>, %arg2: memref<1x32xf32, #tpu.memory_space<vmem>>, %arg3: memref<32x32xf32, #tpu.memory_space<vmem>>) attributes {dimension_semantics = [], scalar_prefetch = 0 : i64, scratch_operands = 0 : i64, tpu.core_type = #tpu.core_type<tc>} {
    %c0 = arith.constant 0 : index
    %c0_0 = arith.constant 0 : index
    %0 = vector.load %arg0[%c0, %c0_0] : memref<32x16xf32, #tpu.memory_space<vmem>>, vector<32x16xf32>
    %c0_1 = arith.constant 0 : index
    %c0_2 = arith.constant 0 : index
    %1 = vector.load %arg1[%c0_1, %c0_2] : memref<16x32xf32, #tpu.memory_space<vmem>>, vector<16x32xf32>
    %cst = arith.constant dense<0.000000e+00> : vector<32x32xf32>
    %2 = tpu.matmul %0, %1, %cst {dimension_numbers = #tpu.dot_dimension_numbers<[1], [0], [0], [1], [0, 0, 1, 1], [], []>} : vector<32x16xf32>, vector<16x32xf32>, vector<32x32xf32> -> vector<32x32xf32>
    %c0_3 = arith.constant 0 : index
    %c0_4 = arith.constant 0 : index
    %3 = vector.load %arg2[%c0_3, %c0_4] : memref<1x32xf32, #tpu.memory_space<vmem>>, vector<1x32xf32>
    %4 = vector.broadcast %3 : vector<1x32xf32> to vector<32x32xf32>
    %5 = arith.addf %2, %4 : vector<32x32xf32>
    %c0_5 = arith.constant 0 : index
    %c0_6 = arith.constant 0 : index
    %6 = vector.load %arg3[%c0_5, %c0_6] : memref<32x32xf32, #tpu.memory_space<vmem>>, vector<32x32xf32>
    tpu.vector_store %arg3[%c0_5, %c0_6], %5 {strides = array<i32>} : memref<32x32xf32, #tpu.memory_space<vmem>>, vector<32x32xf32>,
    return
  }
}

</mosaic_0001>

<bundles_post_ra>
// kernel: tpu_custom_call.1
= control target key start
LH: loop header
LB: loop body
LE: loop exit
PB: predicated region body
PF: predicated region fallthrough
CT: control target
= control target key end

     0   :  { %vm28_vm0 = vcmask 130048   ;;  %s257_s0 = inlined_call_operand.vmem [shape: f32[32,16], index: 0, kind: input, shape index: {}]   ;;  %s258_s1 = inlined_call_operand.vmem [shape: f32[16,32], index: 1, kind: input, shape index: {}]   ;;  %s259_s2 = inlined_call_operand.vmem [shape: f32[1,32], index: 2, kind: input, shape index: {}]   ;;  %s260_s3 = inlined_call_operand.hbm [shape: f32[32,32], index: 3, kind: output, shape index: {}]  }
   0x1   :  { %v19_v0 = vld [vmem:[%s258_s1] sm:$0xff]  ;;  %v20_v1 = vld [vmem:[%s258_s1 + $0x8] sm:$0xff]  ;;  %v17_v4 = vld [vmem:[%s257_s0 + $0x10] sm:$0xff] }
   0x2   :  { %v15_v2 = vld [vmem:[%s257_s0] sm:$0xff]  ;;  %v168_v3 = vpack.c.bf16 %v20_v1, %v19_v0  ;;  %165 = vmatprep.mubr.msk.f32.mxu1 %vm28_vm0, %v17_v4 }
   0x3   :  { %162 = vmatprep.mubr.msk.f32.mxu0 %vm28_vm0, %v15_v2 }
   0x4   :  { %8 = vsyncpa [#allocation3], 0  ;;  %169 = vmatprep.subr.bf16.mxu0 %v168_v3  ;;  %172 = vmatprep.subr.bf16.mxu1 %v168_v3  ;;  %v16_v5 = vld [vmem:[%s257_s0 + $0x8] sm:$0xff]  ;;  %v18_v6 = vld [vmem:[%s257_s0 + $0x18] sm:$0xff]  ;;  %s201_s25 = smov [#allocation2]   ;;  %vm126_vm1 = vcmask 261120  }
   0x5   :  { %171 = vmatpush3.bf16.msra.mxu0 %v168_v3  ;;  %173 = vmatpush3.bf16.msra.mxu1 %v168_v3  ;;  %v147_v7 = vld [vmem:[%s259_s2] ss:$0 sm:$0xff]  ;;  %s136_s26 = sshll.u32 %s201_s25, 4  ;;  %s137_s26 = int_to_ptr.vmem [resolvable:$true] %s136_s26 }
   0x6   :  { %s177_s0 = scalar_lea.vmem %s137_s26, 512  ;;  %p182_p1 = scmp.lt.s32.totalorder %s137_s26, %s137_s26 }
   0x7   :  { %p178_p0 = scmp.ne.s32.totalorder %s137_s26, %s177_s0  ;;  %p183_p2 = scmp.lt.s32.totalorder %s177_s0, %s177_s0 }
   0x8   :  { %163 = vmatmul.mubr.msk.f32.vlgmr.msra.gmra.mrb[0].mxu0 %vm28_vm0, %v16_v5  ;;  %166 = vmatmul.mubr.msk.f32.vlgmr.msra.gmra.mrb[0].mxu1 %vm28_vm0, %v18_v6 }
   0x9   :  { %p184_p3 = por %p183_p2, %p182_p1 }
   0xb   :  { %p185_p4 = pnand %p184_p3, %p178_p0 }
  0xdb   :  { %v164_v8 = vpop.f32.mrb[0].mxu0  ;;  %v167_v9 = vpop.f32.mrb[0].mxu1 }
  0xdc   :  { %v113_v10 = vadd.f32 %v164_v8, %v147_v7  ;;  %v123_v11 = vadd.f32 %v167_v9, %v147_v7  ;;  %v107_v12 = vpop.f32.mrb[1].mxu0  ;;  %v117_v13 = vpop.f32.mrb[1].mxu1 }
  0xdd   :  { %v108_v14 = vadd.f32 %v147_v7, %v107_v12  ;;  %v118_v15 = vadd.f32 %v147_v7, %v117_v13 }
  0xde   :  { %128 = vst.msk [vmem:[#allocation2 + $0x8] sm:$0xff] %vm126_vm1, %v113_v10  ;;  %130 = vst.msk [vmem:[#allocation2 + $0x18] sm:$0xff] %vm126_vm1, %v123_v11 }
  0xdf   :  { %127 = vst.msk [vmem:[#allocation2] sm:$0xff] %vm126_vm1, %v108_v14  ;;  %129 = vst.msk [vmem:[#allocation2 + $0x10] sm:$0xff] %vm126_vm1, %v118_v15 }
  0xe0   :  { %188 = shalt.err (!%p185_p4)
}
  0xe1   :  { %s189_s28 = scalar_lea.hbm %s260_s3, 512 }
  0xe2   :  { %p190_p5 = scmp.ne.s32.totalorder %s260_s3, %s189_s28  ;;  %p193_p6 = scmp.lt.u32.totalorder %s189_s28, %s260_s3 }
  0xe4   :  { %p195_p7 = pnand %p193_p6, %p190_p5 }
  0xe6   :  { %198 = shalt.err (!%p195_p7)
}
  0xe7   :  { %s202_s6 = smov 128   ;;  %s203_s7 = smov 8  }
  0xe8   :  { %142 = dma.vmem_to_hbm [thread:$0]  %s137_s26, 512, %s260_s3, [#allocation3], %s202_s6, %s202_s6, %s203_s7  }
  0xe9   :  { %199 = dma.done.wait [#allocation3], 512  }
  0xea   :  { %200 = vsyncadd [#allocation3], 4294966784 }
  0xeb   :  { %146 = vsyncpa [#allocation3], 1 }

</bundles_post_ra>
